<compile_context>
chip_gen: v7x
topology: tpu7x:2x2x1
jax: 0.10.0
libtpu: 0.0.40
codegen_flags: <defaults>
</compile_context>

<pallas_src>
import jax
import jax.numpy as jnp
from jax.experimental import pallas as pl
from jax.experimental.pallas import tpu as pltpu


def _aig_gate_kernel(x_ref, w1_ref, b1_ref, w2_ref, b2_ref, o_ref, pooled_acc):
    # x_ref:      (n_tile, C, hw_tile)  native dtype (f32 or bf16)
    # w1_ref:     (C, Cm)   f32  -- conv1 weight with BN scale and 1/(H*W) folded in
    # b1_ref:     (1, Cm)   f32  -- conv1 bias + BN affine, folded
    # w2_ref:     (Cm, 2)   f32  -- conv2 weight (pre-transposed)
    # b2_ref:     (1, 2)    f32
    # o_ref:      (n_tile, 2) f32
    # pooled_acc: (n_tile, C) f32 VMEM scratch -- raw spatial sums
    j = pl.program_id(1)  # spatial-reduction step (innermost / "arbitrary")

    @pl.when(j == 0)
    def _init():
        pooled_acc[...] = jnp.zeros_like(pooled_acc)

    # Stream + accumulate: upcast to f32 in-vreg (v5e VPU has no bf16 ALU),
    # reduce over the lane (spatial) axis.  Zero-padded spatial tail (if any)
    # contributes 0 to the sum.
    x = x_ref[...].astype(jnp.float32)
    pooled_acc[...] += jnp.sum(x, axis=-1)  # (n_tile, C)

    @pl.when(j == pl.num_programs(1) - 1)
    def _epilogue():
        pooled = pooled_acc[...]  # raw sums; mean + BN scale folded into w1/b1
        h = jnp.dot(pooled, w1_ref[...],
                    preferred_element_type=jnp.float32) + b1_ref[...]   # (n_tile, Cm)
        h = jnp.where(h >= 0.0, h, 0.01 * h)                            # leaky_relu
        out = jnp.dot(h, w2_ref[...],
                      preferred_element_type=jnp.float32) + b2_ref[...]  # (n_tile, 2)
        o_ref[...] = out.astype(o_ref.dtype)


def _round_up(x, m):
    return ((x + m - 1) // m) * m


def _pick_hw_tile(hw):
    """Return (hw_tile, hw_padded).  hw_tile is lane-dense (mult of 128) or full."""
    if hw <= 1024:
        return hw, hw                      # single full-extent block, no padding
    for t in (512, 384, 256, 128):         # prefer wide tiles that divide exactly
        if hw % t == 0:
            return t, hw
    return 512, _round_up(hw, 512)         # zero-pad the spatial tail


def _pick_n_tile(n, bytes_per_n, budget=2 * 1024 * 1024):
    """Largest batch tile (divisor of n, mult-of-8 or == n) fitting the VMEM budget."""
    cap = max(1, budget // max(1, bytes_per_n))
    if n <= cap:
        return n
    best = None
    d = 8
    while d <= min(n, cap):
        if n % d == 0:
            best = d
        d += 8
    return best if best is not None else n


def aig_gate_forward(x, params, *, eps=1e-5):
    """x: (N, C, H, W) NCHW (f32 or bf16).  Returns (N, 2, 1, 1) float32."""
    N, C, H, W = x.shape
    Cm = C // 4
    HW = H * W

    # ---- fold BN (eval mode), conv1 bias and the 1/(H*W) mean into conv1 ----
    s = params["bn_gamma"] / jnp.sqrt(params["bn_var"] + eps)              # (Cm,)
    w1_eff = (params["w1"].reshape(Cm, C).T * (s / HW)[None, :]).astype(jnp.float32)
    b1_eff = (params["b1"] * s + params["bn_beta"]
              - params["bn_mean"] * s).reshape(1, Cm).astype(jnp.float32)  # (1, Cm)
    w2 = params["w2"].reshape(2, Cm).T.astype(jnp.float32)                 # (Cm, 2)
    b2 = params["b2"].reshape(1, 2).astype(jnp.float32)

    # ---- stream x in its native dtype; pad spatial to a lane-friendly tile ----
    x_flat = x.reshape(N, C, HW)                     # no force-upcast
    hw_tile, hw_pad = _pick_hw_tile(HW)
    if hw_pad != HW:
        x_flat = jnp.pad(x_flat, ((0, 0), (0, 0), (0, hw_pad - HW)))
    hw_steps = hw_pad // hw_tile

    itemsize = jnp.dtype(x_flat.dtype).itemsize
    n_tile = _pick_n_tile(N, C * hw_tile * itemsize)
    n_steps = N // n_tile
    grid = (n_steps, hw_steps)

    flops = N * C * hw_pad + 2 * N * C * Cm + 2 * N * Cm * 2
    bytes_accessed = (x_flat.size * itemsize
                      + (w1_eff.size + b1_eff.size + w2.size + b2.size) * 4
                      + N * 2 * 4)

    out = pl.pallas_call(
        _aig_gate_kernel,
        out_shape=jax.ShapeDtypeStruct((N, 2), jnp.float32),
        grid=grid,
        in_specs=[
            # streamed activation tiles (double-buffered by the Pallas pipeline)
            pl.BlockSpec((n_tile, C, hw_tile), lambda i, j: (i, 0, j)),
            # tiny constant weights: same block every step -> stay resident
            pl.BlockSpec((C, Cm), lambda i, j: (0, 0)),
            pl.BlockSpec((1, Cm), lambda i, j: (0, 0)),
            pl.BlockSpec((Cm, 2), lambda i, j: (0, 0)),
            pl.BlockSpec((1, 2), lambda i, j: (0, 0)),
        ],
        out_specs=pl.BlockSpec((n_tile, 2), lambda i, j: (i, 0)),
        scratch_shapes=[pltpu.VMEM((n_tile, C), jnp.float32)],
        compiler_params=pltpu.CompilerParams(
            dimension_semantics=("parallel", "arbitrary"),
            vmem_limit_bytes=32 * 1024 * 1024,
        ),
        cost_estimate=pl.CostEstimate(
            flops=int(flops), transcendentals=0, bytes_accessed=int(bytes_accessed)),
    )(x_flat, w1_eff, b1_eff, w2, b2)

    return out.reshape(N, 2, 1, 1)


def _make_params(key, in_channel):
    Cm = in_channel // 4
    k1, k2, k3, k4, k5, k6, k7, k8 = jax.random.split(key, 8)
    return {
        # conv1: (out=C//4, in=C, 1, 1) -> stored as (C//4, C)
        "w1": jax.random.normal(k1, (Cm, in_channel), jnp.float32) * 0.1,
        "b1": jax.random.normal(k2, (Cm,), jnp.float32) * 0.1,
        # BatchNorm2d(C//4): affine params + running stats (eval-mode semantics)
        "bn_gamma": 1.0 + 0.1 * jax.random.normal(k3, (Cm,), jnp.float32),
        "bn_beta": 0.1 * jax.random.normal(k4, (Cm,), jnp.float32),
        "bn_mean": 0.05 * jax.random.normal(k5, (Cm,), jnp.float32),
        "bn_var": jnp.abs(1.0 + 0.1 * jax.random.normal(k6, (Cm,), jnp.float32)),
        # conv2: (out=2, in=C//4, 1, 1) -> stored as (2, C//4)
        "w2": jax.random.normal(k7, (2, Cm), jnp.float32) * 0.1,
        "b2": jax.random.normal(k8, (2,), jnp.float32) * 0.1,
    }


def _reference(x, params, eps=1e-5):
    """Plain-JAX reference of the same eval-mode forward, for sanity check."""
    N, C, H, W = x.shape
    pooled = jnp.mean(x.astype(jnp.float32), axis=(2, 3))                  # (N, C)
    h = pooled @ params["w1"].T + params["b1"]
    h = (h - params["bn_mean"]) / jnp.sqrt(params["bn_var"] + eps)
    h = h * params["bn_gamma"] + params["bn_beta"]
    h = jnp.where(h >= 0, h, 0.01 * h)
    out = h @ params["w2"].T + params["b2"]
    return out.reshape(N, 2, 1, 1)


if __name__ == "__main__":
    key = jax.random.PRNGKey(0)

    # Case 1: tiny (single-block path).  Case 2: spatial padding + multi-step
    # streaming reduction path.
    for (N, C, H, W) in [(2, 16, 8, 8), (4, 32, 40, 40)]:
        key, kx, kp = jax.random.split(key, 3)
        x = jax.random.normal(kx, (N, C, H, W), jnp.float32)
        params = _make_params(kp, C)

        out = jax.block_until_ready(aig_gate_forward(x, params))
        ref = _reference(x, params)

        assert out.shape == (N, 2, 1, 1)
        assert jnp.allclose(out, ref, atol=1e-4, rtol=1e-4), (N, C, H, W)

    print("KERNEL_OK")
</pallas_src>

<mosaic_0001>
module attributes {stable_mosaic.version = 11 : i64} {
  func.func @_aig_gate_kernel(%arg0: i32, %arg1: i32, %arg2: memref<2x16x64xf32, #tpu.memory_space<vmem>>, %arg3: memref<16x4xf32, #tpu.memory_space<vmem>>, %arg4: memref<1x4xf32, #tpu.memory_space<vmem>>, %arg5: memref<4x2xf32, #tpu.memory_space<vmem>>, %arg6: memref<1x2xf32, #tpu.memory_space<vmem>>, %arg7: memref<2x2xf32, #tpu.memory_space<vmem>>, %arg8: memref<2x16xf32, #tpu.memory_space<vmem>>) attributes {dimension_semantics = [#tpu.dimension_semantics<parallel>, #tpu.dimension_semantics<arbitrary>], iteration_bounds = array<i64: 1, 1>, scalar_prefetch = 0 : i64, scratch_operands = 1 : i64, tpu.core_type = #tpu.core_type<tc>, window_params = [{transform_indices = @transform_0, window_bounds = array<i64: 2, 16, 64>}, {pipeline_mode = #tpu.pipeline_mode<synchronous>, transform_indices = @transform_1, window_bounds = array<i64: 16, 4>}, {pipeline_mode = #tpu.pipeline_mode<synchronous>, transform_indices = @transform_2, window_bounds = array<i64: 1, 4>}, {pipeline_mode = #tpu.pipeline_mode<synchronous>, transform_indices = @transform_3, window_bounds = array<i64: 4, 2>}, {pipeline_mode = #tpu.pipeline_mode<synchronous>, transform_indices = @transform_4, window_bounds = array<i64: 1, 2>}, {transform_indices = @transform_5, window_bounds = array<i64: 2, 2>}]} {
    %c0_i32 = arith.constant 0 : i32
    %0 = arith.cmpi eq, %arg1, %c0_i32 : i32
    %1 = arith.extui %0 : i1 to i32
    %c0_i32_0 = arith.constant 0 : i32
    %2 = arith.cmpi ne, %1, %c0_i32_0 : i32
    scf.if %2 {
      %cst_9 = arith.constant 0.000000e+00 : f32
      %11 = vector.broadcast %cst_9 : f32 to vector<2x16xf32>
      %c0_10 = arith.constant 0 : index
      %c0_11 = arith.constant 0 : index
      %12 = vector.load %arg8[%c0_10, %c0_11] : memref<2x16xf32, #tpu.memory_space<vmem>>, vector<2x16xf32>
      tpu.vector_store %arg8[%c0_10, %c0_11], %11 {strides = array<i32>} : memref<2x16xf32, #tpu.memory_space<vmem>>, vector<2x16xf32>,
    } else {
    }
    %c0 = arith.constant 0 : index
    %c0_1 = arith.constant 0 : index
    %c0_2 = arith.constant 0 : index
    %3 = vector.load %arg2[%c0, %c0_1, %c0_2] : memref<2x16x64xf32, #tpu.memory_space<vmem>>, vector<2x16x64xf32>
    %c0_3 = arith.constant 0 : index
    %c0_4 = arith.constant 0 : index
    %4 = vector.load %arg8[%c0_3, %c0_4] : memref<2x16xf32, #tpu.memory_space<vmem>>, vector<2x16xf32>
    %cst = arith.constant dense<0.000000e+00> : vector<2x16xf32>
    %5 = vector.multi_reduction <add>, %3, %cst [2] : vector<2x16x64xf32> to vector<2x16xf32>
    %6 = arith.addf %4, %5 : vector<2x16xf32>
    %c0_5 = arith.constant 0 : index
    %c0_6 = arith.constant 0 : index
    %7 = vector.load %arg8[%c0_5, %c0_6] : memref<2x16xf32, #tpu.memory_space<vmem>>, vector<2x16xf32>
    tpu.vector_store %arg8[%c0_5, %c0_6], %6 {strides = array<i32>} : memref<2x16xf32, #tpu.memory_space<vmem>>, vector<2x16xf32>,
    %c0_i32_7 = arith.constant 0 : i32
    %8 = arith.cmpi eq, %arg1, %c0_i32_7 : i32
    %9 = arith.extui %8 : i1 to i32
    %c0_i32_8 = arith.constant 0 : i32
    %10 = arith.cmpi ne, %9, %c0_i32_8 : i32
    scf.if %10 {
      %c0_9 = arith.constant 0 : index
      %c0_10 = arith.constant 0 : index
      %11 = vector.load %arg8[%c0_9, %c0_10] : memref<2x16xf32, #tpu.memory_space<vmem>>, vector<2x16xf32>
      %c0_11 = arith.constant 0 : index
      %c0_12 = arith.constant 0 : index
      %12 = vector.load %arg3[%c0_11, %c0_12] : memref<16x4xf32, #tpu.memory_space<vmem>>, vector<16x4xf32>
      %cst_13 = arith.constant dense<0.000000e+00> : vector<2x4xf32>
      %13 = tpu.matmul %11, %12, %cst_13 {dimension_numbers = #tpu.dot_dimension_numbers<[1], [0], [0], [1], [0, 0, 1, 1], [], []>} : vector<2x16xf32>, vector<16x4xf32>, vector<2x4xf32> -> vector<2x4xf32>
      %c0_14 = arith.constant 0 : index
      %c0_15 = arith.constant 0 : index
      %14 = vector.load %arg4[%c0_14, %c0_15] : memref<1x4xf32, #tpu.memory_space<vmem>>, vector<1x4xf32>
      %15 = vector.broadcast %14 : vector<1x4xf32> to vector<2x4xf32>
      %16 = arith.addf %13, %15 : vector<2x4xf32>
      %cst_16 = arith.constant 0.000000e+00 : f32
      %17 = vector.broadcast %cst_16 : f32 to vector<2x4xf32>
      %18 = arith.cmpf oge, %16, %17 : vector<2x4xf32>
      %cst_17 = arith.constant 0.00999999977 : f32
      %19 = vector.broadcast %cst_17 : f32 to vector<2x4xf32>
      %20 = arith.mulf %19, %16 : vector<2x4xf32>
      %21 = arith.select %18, %16, %20 : vector<2x4xi1>, vector<2x4xf32>
      %c0_18 = arith.constant 0 : index
      %c0_19 = arith.constant 0 : index
      %22 = vector.load %arg5[%c0_18, %c0_19] : memref<4x2xf32, #tpu.memory_space<vmem>>, vector<4x2xf32>
      %cst_20 = arith.constant dense<0.000000e+00> : vector<2x2xf32>
      %23 = tpu.matmul %21, %22, %cst_20 {dimension_numbers = #tpu.dot_dimension_numbers<[1], [0], [0], [1], [0, 0, 1, 1], [], []>} : vector<2x4xf32>, vector<4x2xf32>, vector<2x2xf32> -> vector<2x2xf32>
      %c0_21 = arith.constant 0 : index
      %c0_22 = arith.constant 0 : index
      %24 = vector.load %arg6[%c0_21, %c0_22] : memref<1x2xf32, #tpu.memory_space<vmem>>, vector<1x2xf32>
      %25 = vector.broadcast %24 : vector<1x2xf32> to vector<2x2xf32>
      %26 = arith.addf %23, %25 : vector<2x2xf32>
      %c0_23 = arith.constant 0 : index
      %c0_24 = arith.constant 0 : index
      %27 = vector.load %arg7[%c0_23, %c0_24] : memref<2x2xf32, #tpu.memory_space<vmem>>, vector<2x2xf32>
      tpu.vector_store %arg7[%c0_23, %c0_24], %26 {strides = array<i32>} : memref<2x2xf32, #tpu.memory_space<vmem>>, vector<2x2xf32>,
    } else {
    }
    return
  }
  func.func @transform_0(%arg0: i32, %arg1: i32) -> (i32, i32, i32) {
    %c0_i32 = arith.constant 0 : i32
    %c0_i32_0 = arith.constant 0 : i32
    return %arg0, %c0_i32, %arg1 : i32, i32, i32
  }
  func.func @transform_1(%arg0: i32, %arg1: i32) -> (i32, i32) {
    %c0_i32 = arith.constant 0 : i32
    %c0_i32_0 = arith.constant 0 : i32
    %c0_i32_1 = arith.constant 0 : i32
    return %c0_i32, %c0_i32_0 : i32, i32
  }
  func.func @transform_2(%arg0: i32, %arg1: i32) -> (i32, i32) {
    %c0_i32 = arith.constant 0 : i32
    %c0_i32_0 = arith.constant 0 : i32
    %c0_i32_1 = arith.constant 0 : i32
    return %c0_i32, %c0_i32_0 : i32, i32
  }
  func.func @transform_3(%arg0: i32, %arg1: i32) -> (i32, i32) {
    %c0_i32 = arith.constant 0 : i32
    %c0_i32_0 = arith.constant 0 : i32
    %c0_i32_1 = arith.constant 0 : i32
    return %c0_i32, %c0_i32_0 : i32, i32
  }
  func.func @transform_4(%arg0: i32, %arg1: i32) -> (i32, i32) {
    %c0_i32 = arith.constant 0 : i32
    %c0_i32_0 = arith.constant 0 : i32
    %c0_i32_1 = arith.constant 0 : i32
    return %c0_i32, %c0_i32_0 : i32, i32
  }
  func.func @transform_5(%arg0: i32, %arg1: i32) -> (i32, i32) {
    %c0_i32 = arith.constant 0 : i32
    %c0_i32_0 = arith.constant 0 : i32
    return %arg0, %c0_i32 : i32, i32
  }
}

</mosaic_0001>

<bundles_post_ra>
// kernel: tpu_custom_call.1
= control target key start
LH: loop header
LB: loop body
LE: loop exit
PB: predicated region body
PF: predicated region fallthrough
CT: control target
= control target key end

     0   :  { %10 = vsyncpa [#allocation4], 0  ;;  %s442_s0 = inlined_call_operand.hbm [shape: f32[2,16,64], index: 0, kind: input, shape index: {}]   ;;  %s443_s1 = inlined_call_operand.vmem [shape: f32[16,4], index: 1, kind: input, shape index: {}]   ;;  %s444_s2 = inlined_call_operand.vmem [shape: f32[1,4], index: 2, kind: input, shape index: {}]   ;;  %s445_s3 = inlined_call_operand.vmem [shape: f32[4,2], index: 3, kind: input, shape index: {}]   ;;  %s446_s4 = inlined_call_operand.vmem [shape: f32[1,2], index: 4, kind: input, shape index: {}]   ;;  %s447_s5 = inlined_call_operand.hbm [shape: f32[2,2], index: 5, kind: output, shape index: {}]  }
   0x1   :  { %11 = vsyncpa [#allocation5], 0  ;;  %s364_s18 = smov [#allocation3]   ;;  %s316_s22 = scalar_lea.hbm %s442_s0, 512 }
   0x2   :  { %s17_s19 = sshll.u32 %s364_s18, 4  ;;  %p317_p0 = scmp.ne.s32.totalorder %s442_s0, %s316_s22  ;;  %s18_s19 = int_to_ptr.vmem [resolvable:$true] %s17_s19 }
   0x3   :  { %p320_p1 = scmp.lt.u32.totalorder %s316_s22, %s442_s0 }
   0x5   :  { %p322_p2 = pnand %p320_p1, %p317_p0 }
   0x7   :  { %325 = shalt.err (!%p322_p2)
}
   0x8   :  { %s326_s27 = scalar_lea.vmem %s18_s19, 512  ;;  %p331_p4 = scmp.lt.s32.totalorder %s18_s19, %s18_s19 }
   0x9   :  { %p327_p3 = scmp.ne.s32.totalorder %s18_s19, %s326_s27  ;;  %p332_p5 = scmp.lt.s32.totalorder %s326_s27, %s326_s27 }
   0xb   :  { %p333_p6 = por %p332_p5, %p331_p4 }
   0xd   :  { %p334_p7 = pnand %p333_p6, %p327_p3 }
   0xf   :  { %337 = shalt.err (!%p334_p7)
}
  0x10   :  { %s365_s28 = smov 128   ;;  %s366_s29 = smov 8  }
  0x11   :  { %23 = dma.hbm_to_vmem [thread:$0]  %s442_s0, 512, %s18_s19, [#allocation4], %s365_s28, %s365_s28, %s366_s29  }
  0x12   :  { %360 = dma.done.wait [#allocation4], 512  }
  0x13   :  { %361 = vsyncadd [#allocation4], 4294966784  ;;  %vm46_vm0 = vcmask 523264   ;;  %v43_v0 = vld [vmem:[#allocation3 + $0x10] sm:$0xff]  ;;  %v41_v1 = vld [vmem:[#allocation3] sm:$0xff]  ;;  %vm39_vm1 = vcmask 123904   ;;  %v63_v13 = vlaneseq }
  0x14   :  { %v44_v2 = vld [vmem:[#allocation3 + $0x18] sm:$0xff]  ;;  %v53_v3 = vsel %vm46_vm0, %v43_v0, 0.0  ;;  %v47_v4 = vsel %vm46_vm0, %v41_v1, 0.0  ;;  %v42_v5 = vld [vmem:[#allocation3 + $0x8] sm:$0xff]  ;;  %v367_v8 = vmov 0.0   ;;  %v368_v11 = vmov 0.0|0.0  }
  0x15   :  { %54 = vadd.xlane.f32.xlu1 %v53_v3  ;;  %48 = vadd.xlane.f32.xlu0 %v47_v4  ;;  %v56_v6 = vsel %vm46_vm0, %v44_v2, 0.0  ;;  %v50_v7 = vsel %vm46_vm0, %v42_v5, 0.0  ;;  %40 = vst.msk [vmem:[#allocation2] sm:$0x3] %vm39_vm1, %v367_v8  ;;  %v95_v9 = vld [vmem:[%s443_s1] sm:$0xff]  ;;  %v96_v10 = vld [vmem:[%s443_s1 + $0x8] sm:$0xff] }
  0x16   :  { %301 = vmatprep.subr.mxu1 %v367_v8  ;;  %306 = vmatprep.subr.bf16.mxu0 %v368_v11  ;;  %v307_v12 = vpack.c.bf16 %v96_v10, %v95_v9  ;;  %vm369_vm2 = vmmov 0   ;;  %v64_v14 = vand.u32 127, %v63_v13  ;;  %v66_v15 = vshrl.u32 %v63_v13, 7  ;;  %v181_v33 = vld [vmem:[%s445_s3] sm:$0xf]  ;;  %s370_s15 = smov [#allocation6]  }
  0x17   :  { %298 = vmatprep.mubr.msk.f32.mxu0 %vm369_vm2, %v367_v8  ;;  %303 = vmatprep.mubr.msk.f32.mxu1 %vm369_vm2, %v367_v8  ;;  %vm74_vm3 = vcmask 130112   ;;  %vm85_vm4 = vcmask 1041409   ;;  %vm104_vm5 = vcmask 130048   ;;  %vm193_vm6 = vcmask 1043456   ;;  %v284_v34 = vld [vmem:[%s444_s2] ss:$0 sm:$0xff] }
  0x18   :  { %308 = vmatpush3.bf16.msra.mxu0 %v307_v12  ;;  %v69_v16 = vadd.s32 4294967288, %v64_v14  ;;  %v67_v19 = vsub.s32 %v64_v14, %v66_v15  ;;  %302 = vmatpush3.msk.msra.mxu1 %vm193_vm6, %v181_v33  ;;  %vm189_vm8 = vcmask 31744   ;;  %v286_v40 = vld [vmem:[%s446_s4] ss:$0 sm:$0xff]  ;;  %s275_s3 = sshll.u32 %s370_s15, 4  ;;  %vm267_vm9 = vcmask 9216   ;;  %s276_s3 = int_to_ptr.vmem [resolvable:$true] %s275_s3 }
  0x19   :  { %57 = vadd.xlane.f32.xlu1 %v56_v6  ;;  %51 = vadd.xlane.f32.xlu0 %v50_v7  ;;  %s338_s2 = scalar_lea.vmem %s276_s3, 32  ;;  %p343_p9 = scmp.lt.s32.totalorder %s276_s3, %s276_s3 }
  0x1a   :  { %v72_v20 = vsub.s32 %v69_v16, %v66_v15  ;;  %p339_p8 = scmp.ne.s32.totalorder %s276_s3, %s338_s2  ;;  %p344_p10 = scmp.lt.s32.totalorder %s338_s2, %s338_s2 }
  0x1c   :  { %v45_v27 = vld [vmem:[#allocation2] sm:$0x3]  ;;  %p345_p11 = por %p344_p10, %p343_p9 }
  0x1e   :  { %p346_p12 = pnand %p345_p11, %p339_p8 }
  0xa2   :  { %v55_v17 = vpop.xlane.xlu1 %54  ;;  %v49_v18 = vpop.xlane.xlu0 %48 }
  0xa3   :  { %v79_v23 = vrot.slane %v55_v17, %v67_v19  ;;  %v68_v24 = vrot.slane %v49_v18, %v67_v19 }
  0xa6   :  { %v58_v21 = vpop.xlane.xlu1 %57  ;;  %v52_v22 = vpop.xlane.xlu0 %51 }
  0xa7   :  { %v83_v25 = vrot.slane %v58_v21, %v72_v20  ;;  %v73_v26 = vrot.slane %v52_v22, %v72_v20 }
  0xa9   :  { %v84_v28 = vsel %vm74_vm3, %v83_v25, %v79_v23  ;;  %v75_v29 = vsel %vm74_vm3, %v73_v26, %v68_v24 }
  0xaa   :  { %v86_v30 = vsel %vm85_vm4, %v84_v28, %v75_v29 }
  0xab   :  { %v88_v31 = vadd.f32 %v86_v30, %v45_v27 }
  0xad   :  { %90 = vst.msk [vmem:[#allocation2] sm:$0x3] %vm39_vm1, %v88_v31 }
  0xb4   :  { %v94_v32 = vld [vmem:[#allocation2] sm:$0x3] }
  0xb5   :  { %299 = vmatmul.mubr.msk.f32.vlgmr.msra.gmra.mrb[0].mxu0 %vm104_vm5, %v94_v32 }
 0x188   :  { %v174_v35 = vpop.f32.mrb[0].mxu0 }
 0x189   :  { %v175_v36 = vadd.f32 %v284_v34, %v174_v35  ;;  %v300_v37 = vpop.f32.mrb[1].mxu0 }
 0x18b   :  { %vm178_vm7 = vcmp.ge.f32.partialorder %v175_v36, 0.0  ;;  %v179_v38 = vmul.f32 0.01, %v175_v36 }
 0x18d   :  { %v180_v39 = vsel %vm178_vm7, %v175_v36, %v179_v38 }
 0x18e   :  { %304 = vmatmul.mubr.msk.f32.vlgmr.msra.gmra.mrb[0].mxu1 %vm189_vm8, %v180_v39 }
 0x261   :  { %v263_v41 = vpop.f32.mrb[0].mxu1 }
 0x262   :  { %v264_v42 = vadd.f32 %v286_v40, %v263_v41  ;;  %v305_v43 = vpop.f32.mrb[1].mxu1 }
 0x264   :  { %268 = vst.msk [vmem:[#allocation6] sm:$0x3] %vm267_vm9, %v264_v42 }
 0x265   :  { %349 = shalt.err (!%p346_p12)
}
 0x266   :  { %s350_s18 = scalar_lea.hbm %s447_s5, 32 }
 0x267   :  { %p351_p13 = scmp.ne.s32.totalorder %s447_s5, %s350_s18  ;;  %p354_p0 = scmp.lt.u32.totalorder %s350_s18, %s447_s5 }
 0x269   :  { %p356_p1 = pnand %p354_p0, %p351_p13 }
 0x26b   :  { %359 = shalt.err (!%p356_p1)
}
 0x26c   :  { %278 = dma.vmem_to_hbm [thread:$0]  %s276_s3, 32, %s447_s5, [#allocation5]  }
 0x26d   :  { %362 = dma.done.wait [#allocation5], 32  }
 0x26e   :  { %363 = vsyncadd [#allocation5], 4294967264 }
 0x26f   :  { %282 = vsyncpa [#allocation4], 1 }
 0x270   :  { %283 = vsyncpa [#allocation5], 1 }

</bundles_post_ra>
